<compile_context>
chip_gen: v7x
topology: tpu7x:2x2x1
jax: 0.10.0
libtpu: 0.0.40
codegen_flags: <defaults>
</compile_context>

<pallas_src>
import math

import jax
import jax.numpy as jnp
from jax.experimental import pallas as pl
from jax.experimental.pallas import tpu as pltpu

_LANE = 128
_SUBLANE = 8
_MAX_H_CHUNK = 1024  # hidden-dim chunk size when chunking is needed


def _round_up(x, m):
    return ((x + m - 1) // m) * m


# ----------------------------------------------------------------------------
# Kernel
# ----------------------------------------------------------------------------
def _mlp_kernel(x_ref, w1_ref, b1_ref, w2_ref, b2_ref, o_ref):
    # x_ref : (TM, Din_p)  bf16
    # w1_ref: (Din_p, HK)  bf16      b1_ref: (1, HK)     f32
    # w2_ref: (HK, Dout_p) bf16      b2_ref: (1, Dout_p) f32
    # o_ref : (TM, Dout_p) f32  -- resident across the hidden-chunk axis,
    #                              used directly as the f32 accumulator.
    k = pl.program_id(1)

    @pl.when(k == 0)
    def _():
        o_ref[...] = jnp.zeros_like(o_ref)

    # fc1 chunk (full Din reduction per chunk, so GELU per chunk is exact).
    h = jnp.dot(x_ref[...], w1_ref[...],
                preferred_element_type=jnp.float32) + b1_ref[...]
    # PyTorch nn.GELU() default = exact erf formulation (kept for parity).
    h = 0.5 * h * (1.0 + jax.lax.erf(h * (1.0 / math.sqrt(2.0))))
    # Dropout(p=0) is identity -> no RNG needed.
    o_ref[...] += jnp.dot(h.astype(jnp.bfloat16), w2_ref[...],
                          preferred_element_type=jnp.float32)

    @pl.when(k == pl.num_programs(1) - 1)
    def _():
        o_ref[...] += b2_ref[...]


# ----------------------------------------------------------------------------
# VMEM budgeting
# ----------------------------------------------------------------------------
def _vmem_limit_bytes():
    # ~75% of physical VMEM (v5e/v6e: 128 MiB -> 96 MiB cap at 100 MiB;
    # v7x: 64 MiB -> 48 MiB). Falls back to 48 MiB if the query is unavailable.
    cap = 64 * 1024 * 1024
    try:
        info = pltpu.get_tpu_info()
        cap = int(getattr(info, "vmem_capacity_bytes", cap) or cap)
    except Exception:
        pass
    return min(int(cap * 0.75), 100 * 1024 * 1024)


def _step_footprint_bytes(tm, din_p, hk, dout_p, n_chunks):
    """Approximate per-step VMEM residency for a given tiling."""
    w_buf = 1 if n_chunks == 1 else 2      # resident (single-buffered) vs pipelined
    return (2 * tm * din_p * 2             # x tile, bf16, double-buffered
            + w_buf * din_p * hk * 2       # w1 chunk(s), bf16
            + w_buf * hk * 4               # b1 chunk(s), f32
            + w_buf * hk * dout_p * 2      # w2 chunk(s), bf16
            + dout_p * 4                   # b2, f32
            + 2 * tm * dout_p * 4          # output/accumulator block, f32
            + 2 * tm * hk * 4)             # hidden intermediate + slack, f32


def _pick_hidden_chunk(din_p, hid_p128, dout_p, budget):
    """Full weight residency when it fits; otherwise chunk H."""
    if _step_footprint_bytes(256, din_p, hid_p128, dout_p, n_chunks=1) <= budget:
        return hid_p128
    hk = _MAX_H_CHUNK
    while hk > _LANE and _step_footprint_bytes(256, din_p, hk, dout_p, 2) > budget:
        hk //= 2
    return max(hk, _LANE)


def _choose_tm(n, din_p, hid_p, dout_p, hk, budget):
    n_chunks = hid_p // hk
    if n >= 1024 and hid_p <= 2048:
        tm = 512                  # big-N, small-H: bigger tiles amortize overhead
    elif n >= 256:
        tm = 256                  # full 256-row MXU pass (v6e/v7x), >=2 steps for n>=512
    else:
        tm = _round_up(n, _SUBLANE)
    while tm > _SUBLANE and _step_footprint_bytes(tm, din_p, hk, dout_p, n_chunks) > budget:
        tm = max(_SUBLANE, tm // 2)
    return tm


# ----------------------------------------------------------------------------
# Parameter prep (done once, outside the per-call path)
# ----------------------------------------------------------------------------
def prepare_mlp_params(w1, b1, w2, b2):
    """w1: (Din, H); b1: (H,); w2: (H, Dout); b2: (Dout,). Pads + casts once."""
    din, hid = w1.shape
    dout = w2.shape[1]
    din_p = _round_up(din, _LANE)
    dout_p = _round_up(dout, _LANE)
    hid_p128 = _round_up(hid, _LANE)

    budget = _vmem_limit_bytes()
    hk = _pick_hidden_chunk(din_p, hid_p128, dout_p, budget)
    hid_p = _round_up(hid, hk)          # multiple of the chunk size (and of 128)

    # Zero-padding is exact: padded Din cols hit zero W1 rows, padded hidden
    # cols give gelu(0)=0 against zero W2 rows, padded rows/cols sliced off.
    w1_p = jnp.pad(w1, ((0, din_p - din), (0, hid_p - hid))).astype(jnp.bfloat16)
    w2_p = jnp.pad(w2, ((0, hid_p - hid), (0, dout_p - dout))).astype(jnp.bfloat16)
    b1_p = jnp.pad(b1, (0, hid_p - hid)).reshape(1, hid_p).astype(jnp.float32)
    b2_p = jnp.pad(b2, (0, dout_p - dout)).reshape(1, dout_p).astype(jnp.float32)

    meta = dict(din=din, hid=hid, dout=dout,
                din_p=din_p, hid_p=hid_p, dout_p=dout_p, hk=hk, budget=budget)
    return (w1_p, b1_p, w2_p, b2_p), meta


# ----------------------------------------------------------------------------
# Forward
# ----------------------------------------------------------------------------
def mlp_pallas(x2d, params, meta):
    """x2d: (N, Din) f32/bf16; params from prepare_mlp_params."""
    w1_p, b1_p, w2_p, b2_p = params
    n, din = x2d.shape
    assert din == meta["din"]
    din_p, hid_p, dout_p, hk = meta["din_p"], meta["hid_p"], meta["dout_p"], meta["hk"]
    dout, budget = meta["dout"], meta["budget"]
    n_chunks = hid_p // hk

    tm = _choose_tm(n, din_p, hid_p, dout_p, hk, budget)
    n_p = _round_up(n, tm)

    # bf16 x (MXU math is bf16 anyway); pad only when actually ragged.
    x_in = x2d if x2d.dtype == jnp.bfloat16 else x2d.astype(jnp.bfloat16)
    if (n_p != n) or (din_p != din):
        x_in = jnp.pad(x_in, ((0, n_p - n), (0, din_p - din)))

    grid = (n_p // tm, n_chunks)

    cost = pl.CostEstimate(
        flops=2 * n_p * (din_p * hid_p + hid_p * dout_p),
        transcendentals=n_p * hid_p,   # advisory; exact erf lowers to a polynomial
        bytes_accessed=(x_in.size * 2 + w1_p.size * 2 + w2_p.size * 2
                        + b1_p.size * 4 + b2_p.size * 4 + n_p * dout_p * 4),
    )

    weights_invariant = (n_chunks == 1)

    def _call(single_buffer):
        def spec(shape, imap, invariant=False):
            if single_buffer and invariant:
                # Invariant operand: fetched once; one VMEM buffer is enough.
                return pl.BlockSpec(shape, imap, pipeline_mode=pl.Buffered(1))
            return pl.BlockSpec(shape, imap)

        return pl.pallas_call(
            _mlp_kernel,
            out_shape=jax.ShapeDtypeStruct((n_p, dout_p), jnp.float32),
            grid_spec=pltpu.PrefetchScalarGridSpec(
                num_scalar_prefetch=0,
                grid=grid,
                in_specs=[
                    spec((tm, din_p), lambda i, k: (i, 0)),
                    spec((din_p, hk), lambda i, k: (0, k), weights_invariant),
                    spec((1, hk), lambda i, k: (0, k), weights_invariant),
                    spec((hk, dout_p), lambda i, k: (k, 0), weights_invariant),
                    spec((1, dout_p), lambda i, k: (0, 0), True),
                ],
                out_specs=pl.BlockSpec((tm, dout_p), lambda i, k: (i, 0)),
            ),
            compiler_params=pltpu.CompilerParams(
                dimension_semantics=("parallel", "arbitrary"),
                vmem_limit_bytes=budget,
            ),
            cost_estimate=cost,
        )(x_in, w1_p, b1_p, w2_p, b2_p)

    try:
        out_p = _call(True)
    except Exception:
        # Fallback if Buffered(1) single-buffering is rejected by this backend.
        out_p = _call(False)

    if (n_p != n) or (dout_p != dout):
        return out_p[:n, :dout]
    return out_p


def make_mlp(w1, b1, w2, b2):
    """Returns forward(x) applying the Mlp over the last dim (like nn.Linear)."""
    params, meta = prepare_mlp_params(w1, b1, w2, b2)

    def forward(x):
        lead = x.shape[:-1]
        out2d = mlp_pallas(x.reshape(-1, x.shape[-1]), params, meta)
        return out2d.reshape(*lead, out2d.shape[-1])

    return forward


def _init_linear(key, fan_in, fan_out):
    # Deterministic init mimicking nn.Linear defaults; stored transposed
    # relative to PyTorch ((fan_in, fan_out)) so y = x @ w + b.
    kw, kb = jax.random.split(key)
    bound = 1.0 / math.sqrt(fan_in)
    w = jax.random.uniform(kw, (fan_in, fan_out), jnp.float32, -bound, bound)
    b = jax.random.uniform(kb, (fan_out,), jnp.float32, -bound, bound)
    return w, b


if __name__ == "__main__":
    key = jax.random.PRNGKey(0)
    k_x, k_fc1, k_fc2 = jax.random.split(key, 3)

    B, S = 2, 8
    in_features = 32
    hidden_features = 64
    out_features = 32

    x = jax.random.normal(k_x, (B, S, in_features), jnp.float32)
    w1, b1 = _init_linear(k_fc1, in_features, hidden_features)
    w2, b2 = _init_linear(k_fc2, hidden_features, out_features)

    mlp = make_mlp(w1, b1, w2, b2)
    out = jax.block_until_ready(mlp(x))

    # Pure-JAX f32 reference (PyTorch semantics). Kernel uses bf16 MXU dots with
    # f32 accumulation (intentional precision tradeoff), so tolerance is relaxed.
    h_ref = x @ w1 + b1
    h_ref = 0.5 * h_ref * (1.0 + jax.lax.erf(h_ref / math.sqrt(2.0)))
    ref = h_ref @ w2 + b2
    assert out.shape == (B, S, out_features)
    assert jnp.allclose(out, ref, atol=3e-2, rtol=3e-2), float(
        jnp.max(jnp.abs(out - ref)))

    print("KERNEL_OK")
</pallas_src>

<mosaic_0001>
module attributes {stable_mosaic.version = 11 : i64} {
  func.func @_mlp_kernel(%arg0: i32, %arg1: i32, %arg2: memref<16x128xbf16, #tpu.memory_space<vmem>>, %arg3: memref<128x128xbf16, #tpu.memory_space<vmem>>, %arg4: memref<1x128xf32, #tpu.memory_space<vmem>>, %arg5: memref<128x128xbf16, #tpu.memory_space<vmem>>, %arg6: memref<1x128xf32, #tpu.memory_space<vmem>>, %arg7: memref<16x128xf32, #tpu.memory_space<vmem>>) attributes {dimension_semantics = [#tpu.dimension_semantics<parallel>, #tpu.dimension_semantics<arbitrary>], iteration_bounds = array<i64: 1, 1>, scalar_prefetch = 0 : i64, scratch_operands = 0 : i64, tpu.core_type = #tpu.core_type<tc>, window_params = [{transform_indices = @transform_0, window_bounds = array<i64: 16, 128>}, {pipeline_mode = #tpu.pipeline_mode<synchronous>, transform_indices = @transform_1, window_bounds = array<i64: 128, 128>}, {pipeline_mode = #tpu.pipeline_mode<synchronous>, transform_indices = @transform_2, window_bounds = array<i64: 1, 128>}, {pipeline_mode = #tpu.pipeline_mode<synchronous>, transform_indices = @transform_3, window_bounds = array<i64: 128, 128>}, {pipeline_mode = #tpu.pipeline_mode<synchronous>, transform_indices = @transform_4, window_bounds = array<i64: 1, 128>}, {transform_indices = @transform_5, window_bounds = array<i64: 16, 128>}]} {
    %c0_i32 = arith.constant 0 : i32
    %0 = arith.cmpi eq, %arg1, %c0_i32 : i32
    %1 = arith.extui %0 : i1 to i32
    %c0_i32_0 = arith.constant 0 : i32
    %2 = arith.cmpi ne, %1, %c0_i32_0 : i32
    scf.if %2 {
      %cst_18 = arith.constant 0.000000e+00 : f32
      %26 = vector.broadcast %cst_18 : f32 to vector<16x128xf32>
      %c0_19 = arith.constant 0 : index
      %c0_20 = arith.constant 0 : index
      %27 = vector.load %arg7[%c0_19, %c0_20] : memref<16x128xf32, #tpu.memory_space<vmem>>, vector<16x128xf32>
      tpu.vector_store %arg7[%c0_19, %c0_20], %26 {strides = array<i32>} : memref<16x128xf32, #tpu.memory_space<vmem>>, vector<16x128xf32>,
    } else {
    }
    %c0 = arith.constant 0 : index
    %c0_1 = arith.constant 0 : index
    %3 = vector.load %arg2[%c0, %c0_1] : memref<16x128xbf16, #tpu.memory_space<vmem>>, vector<16x128xbf16>
    %c0_2 = arith.constant 0 : index
    %c0_3 = arith.constant 0 : index
    %4 = vector.load %arg3[%c0_2, %c0_3] : memref<128x128xbf16, #tpu.memory_space<vmem>>, vector<128x128xbf16>
    %cst = arith.constant dense<0.000000e+00> : vector<16x128xf32>
    %5 = tpu.matmul %3, %4, %cst {dimension_numbers = #tpu.dot_dimension_numbers<[1], [0], [0], [1], [0, 0, 1, 1], [], []>} : vector<16x128xbf16>, vector<128x128xbf16>, vector<16x128xf32> -> vector<16x128xf32>
    %c0_4 = arith.constant 0 : index
    %c0_5 = arith.constant 0 : index
    %6 = vector.load %arg4[%c0_4, %c0_5] : memref<1x128xf32, #tpu.memory_space<vmem>>, vector<1x128xf32>
    %7 = vector.broadcast %6 : vector<1x128xf32> to vector<16x128xf32>
    %8 = arith.addf %5, %7 : vector<16x128xf32>
    %cst_6 = arith.constant 5.000000e-01 : f32
    %9 = vector.broadcast %cst_6 : f32 to vector<16x128xf32>
    %10 = arith.mulf %9, %8 : vector<16x128xf32>
    %cst_7 = arith.constant 0.707106769 : f32
    %11 = vector.broadcast %cst_7 : f32 to vector<16x128xf32>
    %12 = arith.mulf %8, %11 : vector<16x128xf32>
    %13 = math.erf %12 : vector<16x128xf32>
    %cst_8 = arith.constant 1.000000e+00 : f32
    %14 = vector.broadcast %cst_8 : f32 to vector<16x128xf32>
    %15 = arith.addf %14, %13 : vector<16x128xf32>
    %16 = arith.mulf %10, %15 : vector<16x128xf32>
    %c0_9 = arith.constant 0 : index
    %c0_10 = arith.constant 0 : index
    %17 = vector.load %arg7[%c0_9, %c0_10] : memref<16x128xf32, #tpu.memory_space<vmem>>, vector<16x128xf32>
    %18 = arith.truncf %16 : vector<16x128xf32> to vector<16x128xbf16>
    %c0_11 = arith.constant 0 : index
    %c0_12 = arith.constant 0 : index
    %19 = vector.load %arg5[%c0_11, %c0_12] : memref<128x128xbf16, #tpu.memory_space<vmem>>, vector<128x128xbf16>
    %cst_13 = arith.constant dense<0.000000e+00> : vector<16x128xf32>
    %20 = tpu.matmul %18, %19, %cst_13 {dimension_numbers = #tpu.dot_dimension_numbers<[1], [0], [0], [1], [0, 0, 1, 1], [], []>} : vector<16x128xbf16>, vector<128x128xbf16>, vector<16x128xf32> -> vector<16x128xf32>
    %21 = arith.addf %17, %20 : vector<16x128xf32>
    %c0_14 = arith.constant 0 : index
    %c0_15 = arith.constant 0 : index
    %22 = vector.load %arg7[%c0_14, %c0_15] : memref<16x128xf32, #tpu.memory_space<vmem>>, vector<16x128xf32>
    tpu.vector_store %arg7[%c0_14, %c0_15], %21 {strides = array<i32>} : memref<16x128xf32, #tpu.memory_space<vmem>>, vector<16x128xf32>,
    %c0_i32_16 = arith.constant 0 : i32
    %23 = arith.cmpi eq, %arg1, %c0_i32_16 : i32
    %24 = arith.extui %23 : i1 to i32
    %c0_i32_17 = arith.constant 0 : i32
    %25 = arith.cmpi ne, %24, %c0_i32_17 : i32
    scf.if %25 {
      %c0_18 = arith.constant 0 : index
      %c0_19 = arith.constant 0 : index
      %26 = vector.load %arg7[%c0_18, %c0_19] : memref<16x128xf32, #tpu.memory_space<vmem>>, vector<16x128xf32>
      %c0_20 = arith.constant 0 : index
      %c0_21 = arith.constant 0 : index
      %27 = vector.load %arg6[%c0_20, %c0_21] : memref<1x128xf32, #tpu.memory_space<vmem>>, vector<1x128xf32>
      %28 = vector.broadcast %27 : vector<1x128xf32> to vector<16x128xf32>
      %29 = arith.addf %26, %28 : vector<16x128xf32>
      %c0_22 = arith.constant 0 : index
      %c0_23 = arith.constant 0 : index
      %30 = vector.load %arg7[%c0_22, %c0_23] : memref<16x128xf32, #tpu.memory_space<vmem>>, vector<16x128xf32>
      tpu.vector_store %arg7[%c0_22, %c0_23], %29 {strides = array<i32>} : memref<16x128xf32, #tpu.memory_space<vmem>>, vector<16x128xf32>,
    } else {
    }
    return
  }
  func.func @transform_0(%arg0: i32, %arg1: i32) -> (i32, i32) {
    %c0_i32 = arith.constant 0 : i32
    %c0_i32_0 = arith.constant 0 : i32
    return %arg0, %c0_i32 : i32, i32
  }
  func.func @transform_1(%arg0: i32, %arg1: i32) -> (i32, i32) {
    %c0_i32 = arith.constant 0 : i32
    %c0_i32_0 = arith.constant 0 : i32
    return %c0_i32, %arg1 : i32, i32
  }
  func.func @transform_2(%arg0: i32, %arg1: i32) -> (i32, i32) {
    %c0_i32 = arith.constant 0 : i32
    %c0_i32_0 = arith.constant 0 : i32
    return %c0_i32, %arg1 : i32, i32
  }
  func.func @transform_3(%arg0: i32, %arg1: i32) -> (i32, i32) {
    %c0_i32 = arith.constant 0 : i32
    %c0_i32_0 = arith.constant 0 : i32
    return %arg1, %c0_i32 : i32, i32
  }
  func.func @transform_4(%arg0: i32, %arg1: i32) -> (i32, i32) {
    %c0_i32 = arith.constant 0 : i32
    %c0_i32_0 = arith.constant 0 : i32
    %c0_i32_1 = arith.constant 0 : i32
    return %c0_i32, %c0_i32_0 : i32, i32
  }
  func.func @transform_5(%arg0: i32, %arg1: i32) -> (i32, i32) {
    %c0_i32 = arith.constant 0 : i32
    %c0_i32_0 = arith.constant 0 : i32
    return %arg0, %c0_i32 : i32, i32
  }
}

module attributes {stable_mosaic.version = 11 : i64} {
  func.func @_mlp_kernel(%arg0: i32, %arg1: i32, %arg2: memref<16x128xbf16, #tpu.memory_space<vmem>>, %arg3: memref<128x128xbf16, #tpu.memory_space<vmem>>, %arg4: memref<1x128xf32, #tpu.memory_space<vmem>>, %arg5: memref<128x128xbf16, #tpu.memory_space<vmem>>, %arg6: memref<1x128xf32, #tpu.memory_space<vmem>>, %arg7: memref<16x128xf32, #tpu.memory_space<vmem>>) attributes {dimension_semantics = [#tpu.dimension_semantics<parallel>, #tpu.dimension_semantics<arbitrary>], iteration_bounds = array<i64: 1, 1>, scalar_prefetch = 0 : i64, scratch_operands = 0 : i64, tpu.core_type = #tpu.core_type<tc>, window_params = [{transform_indices = @transform_0, window_bounds = array<i64: 16, 128>}, {transform_indices = @transform_1, window_bounds = array<i64: 128, 128>}, {transform_indices = @transform_2, window_bounds = array<i64: 1, 128>}, {transform_indices = @transform_3, window_bounds = array<i64: 128, 128>}, {pipeline_mode = #tpu.pipeline_mode<synchronous>, transform_indices = @transform_4, window_bounds = array<i64: 1, 128>}, {transform_indices = @transform_5, window_bounds = array<i64: 16, 128>}]} {
    %c0_i32 = arith.constant 0 : i32
    %0 = arith.cmpi eq, %arg1, %c0_i32 : i32
    %1 = arith.extui %0 : i1 to i32
    %c0_i32_0 = arith.constant 0 : i32
    %2 = arith.cmpi ne, %1, %c0_i32_0 : i32
    scf.if %2 {
      %cst_18 = arith.constant 0.000000e+00 : f32
      %26 = vector.broadcast %cst_18 : f32 to vector<16x128xf32>
      %c0_19 = arith.constant 0 : index
      %c0_20 = arith.constant 0 : index
      %27 = vector.load %arg7[%c0_19, %c0_20] : memref<16x128xf32, #tpu.memory_space<vmem>>, vector<16x128xf32>
      tpu.vector_store %arg7[%c0_19, %c0_20], %26 {strides = array<i32>} : memref<16x128xf32, #tpu.memory_space<vmem>>, vector<16x128xf32>,
    } else {
    }
    %c0 = arith.constant 0 : index
    %c0_1 = arith.constant 0 : index
    %3 = vector.load %arg2[%c0, %c0_1] : memref<16x128xbf16, #tpu.memory_space<vmem>>, vector<16x128xbf16>
    %c0_2 = arith.constant 0 : index
    %c0_3 = arith.constant 0 : index
    %4 = vector.load %arg3[%c0_2, %c0_3] : memref<128x128xbf16, #tpu.memory_space<vmem>>, vector<128x128xbf16>
    %cst = arith.constant dense<0.000000e+00> : vector<16x128xf32>
    %5 = tpu.matmul %3, %4, %cst {dimension_numbers = #tpu.dot_dimension_numbers<[1], [0], [0], [1], [0, 0, 1, 1], [], []>} : vector<16x128xbf16>, vector<128x128xbf16>, vector<16x128xf32> -> vector<16x128xf32>
    %c0_4 = arith.constant 0 : index
    %c0_5 = arith.constant 0 : index
    %6 = vector.load %arg4[%c0_4, %c0_5] : memref<1x128xf32, #tpu.memory_space<vmem>>, vector<1x128xf32>
    %7 = vector.broadcast %6 : vector<1x128xf32> to vector<16x128xf32>
    %8 = arith.addf %5, %7 : vector<16x128xf32>
    %cst_6 = arith.constant 5.000000e-01 : f32
    %9 = vector.broadcast %cst_6 : f32 to vector<16x128xf32>
    %10 = arith.mulf %9, %8 : vector<16x128xf32>
    %cst_7 = arith.constant 0.707106769 : f32
    %11 = vector.broadcast %cst_7 : f32 to vector<16x128xf32>
    %12 = arith.mulf %8, %11 : vector<16x128xf32>
    %13 = math.erf %12 : vector<16x128xf32>
    %cst_8 = arith.constant 1.000000e+00 : f32
    %14 = vector.broadcast %cst_8 : f32 to vector<16x128xf32>
    %15 = arith.addf %14, %13 : vector<16x128xf32>
    %16 = arith.mulf %10, %15 : vector<16x128xf32>
    %c0_9 = arith.constant 0 : index
    %c0_10 = arith.constant 0 : index
    %17 = vector.load %arg7[%c0_9, %c0_10] : memref<16x128xf32, #tpu.memory_space<vmem>>, vector<16x128xf32>
    %18 = arith.truncf %16 : vector<16x128xf32> to vector<16x128xbf16>
    %c0_11 = arith.constant 0 : index
    %c0_12 = arith.constant 0 : index
    %19 = vector.load %arg5[%c0_11, %c0_12] : memref<128x128xbf16, #tpu.memory_space<vmem>>, vector<128x128xbf16>
    %cst_13 = arith.constant dense<0.000000e+00> : vector<16x128xf32>
    %20 = tpu.matmul %18, %19, %cst_13 {dimension_numbers = #tpu.dot_dimension_numbers<[1], [0], [0], [1], [0, 0, 1, 1], [], []>} : vector<16x128xbf16>, vector<128x128xbf16>, vector<16x128xf32> -> vector<16x128xf32>
    %21 = arith.addf %17, %20 : vector<16x128xf32>
    %c0_14 = arith.constant 0 : index
    %c0_15 = arith.constant 0 : index
    %22 = vector.load %arg7[%c0_14, %c0_15] : memref<16x128xf32, #tpu.memory_space<vmem>>, vector<16x128xf32>
    tpu.vector_store %arg7[%c0_14, %c0_15], %21 {strides = array<i32>} : memref<16x128xf32, #tpu.memory_space<vmem>>, vector<16x128xf32>,
    %c0_i32_16 = arith.constant 0 : i32
    %23 = arith.cmpi eq, %arg1, %c0_i32_16 : i32
    %24 = arith.extui %23 : i1 to i32
    %c0_i32_17 = arith.constant 0 : i32
    %25 = arith.cmpi ne, %24, %c0_i32_17 : i32
    scf.if %25 {
      %c0_18 = arith.constant 0 : index
      %c0_19 = arith.constant 0 : index
      %26 = vector.load %arg7[%c0_18, %c0_19] : memref<16x128xf32, #tpu.memory_space<vmem>>, vector<16x128xf32>
      %c0_20 = arith.constant 0 : index
      %c0_21 = arith.constant 0 : index
      %27 = vector.load %arg6[%c0_20, %c0_21] : memref<1x128xf32, #tpu.memory_space<vmem>>, vector<1x128xf32>
      %28 = vector.broadcast %27 : vector<1x128xf32> to vector<16x128xf32>
      %29 = arith.addf %26, %28 : vector<16x128xf32>
      %c0_22 = arith.constant 0 : index
      %c0_23 = arith.constant 0 : index
      %30 = vector.load %arg7[%c0_22, %c0_23] : memref<16x128xf32, #tpu.memory_space<vmem>>, vector<16x128xf32>
      tpu.vector_store %arg7[%c0_22, %c0_23], %29 {strides = array<i32>} : memref<16x128xf32, #tpu.memory_space<vmem>>, vector<16x128xf32>,
    } else {
    }
    return
  }
  func.func @transform_0(%arg0: i32, %arg1: i32) -> (i32, i32) {
    %c0_i32 = arith.constant 0 : i32
    %c0_i32_0 = arith.constant 0 : i32
    return %arg0, %c0_i32 : i32, i32
  }
  func.func @transform_1(%arg0: i32, %arg1: i32) -> (i32, i32) {
    %c0_i32 = arith.constant 0 : i32
    %c0_i32_0 = arith.constant 0 : i32
    return %c0_i32, %arg1 : i32, i32
  }
  func.func @transform_2(%arg0: i32, %arg1: i32) -> (i32, i32) {
    %c0_i32 = arith.constant 0 : i32
    %c0_i32_0 = arith.constant 0 : i32
    return %c0_i32, %arg1 : i32, i32
  }
  func.func @transform_3(%arg0: i32, %arg1: i32) -> (i32, i32) {
    %c0_i32 = arith.constant 0 : i32
    %c0_i32_0 = arith.constant 0 : i32
    return %arg1, %c0_i32 : i32, i32
  }
  func.func @transform_4(%arg0: i32, %arg1: i32) -> (i32, i32) {
    %c0_i32 = arith.constant 0 : i32
    %c0_i32_0 = arith.constant 0 : i32
    %c0_i32_1 = arith.constant 0 : i32
    return %c0_i32, %c0_i32_0 : i32, i32
  }
  func.func @transform_5(%arg0: i32, %arg1: i32) -> (i32, i32) {
    %c0_i32 = arith.constant 0 : i32
    %c0_i32_0 = arith.constant 0 : i32
    return %arg0, %c0_i32 : i32, i32
  }
}

</mosaic_0001>

<bundles_post_ra>
// kernel: tpu_custom_call.1
= control target key start
LH: loop header
LB: loop body
LE: loop exit
PB: predicated region body
PF: predicated region fallthrough
CT: control target
= control target key end

     0   :  { %10 = vsyncpa [#allocation3], 0  ;;  %s657_s0 = inlined_call_operand.hbm [shape: bf16[16,128], index: 0, kind: input, shape index: {}]   ;;  %s658_s1 = inlined_call_operand.hbm [shape: bf16[128,128], index: 1, kind: input, shape index: {}]   ;;  %s659_s2 = inlined_call_operand.vmem [shape: f32[1,128], index: 2, kind: input, shape index: {}]   ;;  %s660_s3 = inlined_call_operand.hbm [shape: bf16[128,128], index: 3, kind: input, shape index: {}]   ;;  %s661_s4 = inlined_call_operand.vmem [shape: f32[1,128], index: 4, kind: input, shape index: {}]   ;;  %s662_s5 = inlined_call_operand.hbm [shape: f32[16,128], index: 5, kind: output, shape index: {}]  }
   0x1   :  { %11 = vsyncpa [#allocation6], 0 }
   0x2   :  { %12 = vsyncpa [#allocation4], 0  ;;  %s547_s18 = smov [#allocation5]   ;;  %s548_s20 = smov [#allocation2]  }
   0x3   :  { %s30_s19 = sshll.u32 %s547_s18, 4  ;;  %s18_s21 = sshll.u32 %s548_s20, 4  ;;  %s31_s19 = int_to_ptr.vmem [resolvable:$true] %s30_s19  ;;  %s587_s21 = int_to_ptr.vmem [resolvable:$true] %s18_s21 }
   0x4   :  { %s453_s24 = scalar_lea.hbm %s658_s1, 1024 }
   0x5   :  { %p454_p0 = scmp.ne.s32.totalorder %s658_s1, %s453_s24  ;;  %p457_p1 = scmp.lt.u32.totalorder %s453_s24, %s658_s1 }
   0x7   :  { %p459_p2 = pnand %p457_p1, %p454_p0 }
   0x9   :  { %462 = shalt.err (!%p459_p2)
}
   0xa   :  { %s463_s29 = scalar_lea.vmem %s31_s19, 1024  ;;  %p468_p4 = scmp.lt.s32.totalorder %s31_s19, %s31_s19 }
   0xb   :  { %p464_p3 = scmp.ne.s32.totalorder %s31_s19, %s463_s29  ;;  %p469_p5 = scmp.lt.s32.totalorder %s463_s29, %s463_s29 }
   0xd   :  { %p470_p6 = por %p469_p5, %p468_p4 }
   0xf   :  { %p471_p7 = pnand %p470_p6, %p464_p3 }
  0x11   :  { %474 = shalt.err (!%p471_p7)
}
  0x12   :  { %s549_s30 = smov 64   ;;  %s550_s6 = smov 4  }
  0x13   :  { %36 = dma.hbm_to_vmem [thread:$0]  %s658_s1, 1024, %s31_s19, [#allocation6], %s549_s30, %s549_s30, %s550_s6  }
  0x14   :  { %s475_s11 = scalar_lea.hbm %s657_s0, 128 }
  0x15   :  { %p476_p8 = scmp.ne.s32.totalorder %s657_s0, %s475_s11  ;;  %p479_p9 = scmp.lt.u32.totalorder %s475_s11, %s657_s0 }
  0x17   :  { %p481_p10 = pnand %p479_p9, %p476_p8 }
  0x19   :  { %484 = shalt.err (!%p481_p10)
}
  0x1a   :  { %s485_s16 = scalar_lea.vmem %s587_s21, 128  ;;  %p490_p12 = scmp.lt.s32.totalorder %s587_s21, %s587_s21 }
  0x1b   :  { %p486_p11 = scmp.ne.s32.totalorder %s587_s21, %s485_s16  ;;  %p491_p13 = scmp.lt.s32.totalorder %s485_s16, %s485_s16 }
  0x1d   :  { %p492_p0 = por %p491_p13, %p490_p12 }
  0x1f   :  { %p493_p1 = pnand %p492_p0, %p486_p11 }
  0x21   :  { %496 = shalt.err (!%p493_p1)
}
  0x22   :  { %24 = dma.hbm_to_vmem [thread:$0]  %s657_s0, 128, %s587_s21, [#allocation3], %s549_s30, %s549_s30, %s550_s6  }
  0x23   :  { %s551_s18 = smov [#allocation7]   ;;  %s497_s23 = scalar_lea.hbm %s660_s3, 1024 }
  0x24   :  { %s44_s19 = sshll.u32 %s551_s18, 4  ;;  %p498_p2 = scmp.ne.s32.totalorder %s660_s3, %s497_s23  ;;  %s45_s19 = int_to_ptr.vmem [resolvable:$true] %s44_s19 }
  0x25   :  { %p501_p3 = scmp.lt.u32.totalorder %s497_s23, %s660_s3 }
  0x27   :  { %p503_p4 = pnand %p501_p3, %p498_p2 }
  0x29   :  { %506 = shalt.err (!%p503_p4)
}
  0x2a   :  { %s507_s28 = scalar_lea.vmem %s45_s19, 1024  ;;  %p512_p6 = scmp.lt.s32.totalorder %s45_s19, %s45_s19 }
  0x2b   :  { %p508_p5 = scmp.ne.s32.totalorder %s45_s19, %s507_s28  ;;  %p513_p7 = scmp.lt.s32.totalorder %s507_s28, %s507_s28 }
  0x2d   :  { %p514_p8 = por %p513_p7, %p512_p6 }
  0x2f   :  { %p515_p9 = pnand %p514_p8, %p508_p5 }
  0x31   :  { %518 = shalt.err (!%p515_p9)
}
  0x32   :  { %50 = dma.hbm_to_vmem [thread:$0]  %s660_s3, 1024, %s45_s19, [#allocation6], %s549_s30, %s549_s30, %s550_s6  }
  0x33   :  { %541 = dma.done.wait [#allocation3], 128  }
  0x34   :  { %542 = vsyncadd [#allocation3], 4294967168 }
  0x35   :  { %543 = dma.done.wait [#allocation6], 2048  }
  0x36   :  { %544 = vsyncadd [#allocation6], 4294965248  ;;  %v552_v0 = vmov 0.0   ;;  %vm553_vm0 = vmmov 0   ;;  %v432_v1 = vld [vmem:[#allocation5] sm:$0xff]   ;;  %v433_v2 = vld [vmem:[#allocation5 + $0x8] sm:$0xff]  }
  0x37   :  { %382 = vmatprep.subr.bf16.mxu0 %v552_v0  ;;  %398 = vmatprep.mubr.msk.bf16.mxu0 %vm553_vm0, %v552_v0  ;;  %v434_v3 = vld [vmem:[#allocation5 + $0x10] sm:$0xff]   ;;  %v441_v4 = vld [vmem:[#allocation7] sm:$0xff]   ;;  %v435_v5 = vld [vmem:[#allocation5 + $0x18] sm:$0xff]   ;;  %s554_s6 = smov [#allocation8]  }
  0x38   :  { %402 = vmatprep.subr.bf16.mxu1 %v552_v0  ;;  %418 = vmatprep.mubr.msk.bf16.mxu1 %vm553_vm0, %v552_v0  ;;  %v442_v6 = vld [vmem:[#allocation7 + $0x8] sm:$0xff]   ;;  %v436_v7 = vld [vmem:[#allocation5 + $0x20] sm:$0xff]   ;;  %v438_v9 = vld [vmem:[#allocation5 + $0x30] sm:$0xff]   ;;  %s332_s7 = sshll.u32 %s554_s6, 4  ;;  %s333_s7 = int_to_ptr.vmem [resolvable:$true] %s332_s7 }
  0x39   :  { %383 = vmatpush3.bf16.msra.mxu0 %v432_v1  ;;  %403 = vmatpush3.bf16.msra.mxu1 %v441_v4  ;;  %v437_v8 = vld [vmem:[#allocation5 + $0x28] sm:$0xff]   ;;  %v439_v10 = vld [vmem:[#allocation5 + $0x38] sm:$0xff]   ;;  %v443_v12 = vld [vmem:[#allocation7 + $0x10] sm:$0xff]   ;;  %s519_s8 = scalar_lea.vmem %s333_s7, 256  ;;  %p524_p11 = scmp.lt.s32.totalorder %s333_s7, %s333_s7 }
  0x3a   :  { %384 = vmatprep.subr.bf16.mxu0 %v552_v0  ;;  %404 = vmatprep.subr.bf16.mxu1 %v552_v0  ;;  %v440_v11 = vld [vmem:[#allocation2] sm:$0xff]   ;;  %v445_v14 = vld [vmem:[#allocation7 + $0x20] sm:$0xff]   ;;  %v446_v15 = vld [vmem:[#allocation7 + $0x28] sm:$0xff]   ;;  %p520_p10 = scmp.ne.s32.totalorder %s333_s7, %s519_s8  ;;  %p525_p12 = scmp.lt.s32.totalorder %s519_s8, %s519_s8 }
  0x3b   :  { %v444_v13 = vld [vmem:[#allocation7 + $0x18] sm:$0xff]   ;;  %v447_v16 = vld [vmem:[#allocation7 + $0x30] sm:$0xff]  }
  0x3c   :  { %v448_v17 = vld [vmem:[#allocation7 + $0x38] sm:$0xff]   ;;  %p526_p13 = por %p525_p12, %p524_p11 }
  0x3d   :  { %385 = vmatpush3.bf16.msra.mxu0 %v433_v2  ;;  %405 = vmatpush3.bf16.msra.mxu1 %v442_v6  ;;  %v345_v18 = vld [vmem:[%s659_s2] ss:$0 sm:$0xff] }
  0x3e   :  { %386 = vmatprep.subr.bf16.mxu0 %v552_v0  ;;  %406 = vmatprep.subr.bf16.mxu1 %v552_v0  ;;  %v363_v37 = vld [vmem:[%s661_s4] ss:$0 sm:$0xff]  ;;  %p527_p0 = pnand %p526_p13, %p520_p10 }
  0x41   :  { %387 = vmatpush3.bf16.msra.mxu0 %v434_v3  ;;  %407 = vmatpush3.bf16.msra.mxu1 %v443_v12 }
  0x42   :  { %388 = vmatprep.subr.bf16.mxu0 %v552_v0  ;;  %408 = vmatprep.subr.bf16.mxu1 %v552_v0 }
  0x45   :  { %389 = vmatpush3.bf16.msra.mxu0 %v435_v5  ;;  %409 = vmatpush3.bf16.msra.mxu1 %v444_v13 }
  0x46   :  { %390 = vmatprep.subr.bf16.mxu0 %v552_v0  ;;  %410 = vmatprep.subr.bf16.mxu1 %v552_v0 }
  0x49   :  { %391 = vmatpush3.bf16.msra.mxu0 %v436_v7  ;;  %411 = vmatpush3.bf16.msra.mxu1 %v445_v14 }
  0x4a   :  { %392 = vmatprep.subr.bf16.mxu0 %v552_v0  ;;  %412 = vmatprep.subr.bf16.mxu1 %v552_v0 }
  0x4d   :  { %393 = vmatpush3.bf16.msra.mxu0 %v437_v8  ;;  %413 = vmatpush3.bf16.msra.mxu1 %v446_v15 }
  0x4e   :  { %394 = vmatprep.subr.bf16.mxu0 %v552_v0  ;;  %414 = vmatprep.subr.bf16.mxu1 %v552_v0 }
  0x51   :  { %395 = vmatpush3.bf16.msra.mxu0 %v438_v9  ;;  %415 = vmatpush3.bf16.msra.mxu1 %v447_v16 }
  0x52   :  { %396 = vmatprep.subr.bf16.mxu0 %v552_v0  ;;  %416 = vmatprep.subr.bf16.mxu1 %v552_v0 }
  0x55   :  { %397 = vmatpush3.bf16.msra.mxu0 %v439_v10  ;;  %417 = vmatpush3.bf16.msra.mxu1 %v448_v17 }
  0x58   :  { %399 = vmatmul.mubr.bf16.vlgmr.msra.gmra.mrb[0].mxu0 %v440_v11 }
 0x12b   :  { %v182_v19 = vpop.f32.mrb[0].mxu0 }
 0x12c   :  { %v183_v20 = vadd.f32 %v345_v18, %v182_v19  ;;  %v400_v21 = vpop.f32.mrb[1].mxu0 }
 0x12d   :  { %v185_v22 = vpop.f32.mrb[2].mxu0 }
 0x12e   :  { %v191_v23 = vmul.f32 0.70710677, %v183_v20  ;;  %v186_v24 = vadd.f32 %v345_v18, %v185_v22  ;;  %v401_v25 = vpop.f32.mrb[3].mxu0  ;;  %v189_v30 = vmul.f32 0.5, %v183_v20 }
 0x130   :  { %449 = verf.f32 %v191_v23  ;;  %v192_v26 = vmul.f32 0.70710677, %v186_v24  ;;  %v190_v31 = vmul.f32 0.5, %v186_v24 }
 0x132   :  { %451 = verf.f32 %v192_v26 }
 0x13a   :  { %v450_v27 = vpop.eup %449 }
 0x13b   :  { %v195_v28 = vadd.f32 1.0, %v450_v27 }
 0x13c   :  { %v452_v29 = vpop.eup %451 }
 0x13d   :  { %v196_v32 = vadd.f32 1.0, %v452_v29  ;;  %v197_v33 = vmul.f32 %v195_v28, %v189_v30 }
 0x13f   :  { %v198_v34 = vmul.f32 %v196_v32, %v190_v31 }
 0x141   :  { %v201_v35 = vpack.c.bf16 %v198_v34, %v197_v33 }
 0x143   :  { %419 = vmatmul.mubr.bf16.vlgmr.msra.gmra.mrb[0].mxu1 %v201_v35 }
 0x216   :  { %v300_v36 = vpop.f32.mrb[0].mxu1 }
 0x217   :  { %v420_v38 = vpop.f32.mrb[1].mxu1  ;;  %v323_v41 = vadd.f32 %v363_v37, %v300_v36 }
 0x218   :  { %v303_v39 = vpop.f32.mrb[2].mxu1 }
 0x219   :  { %v421_v40 = vpop.f32.mrb[3].mxu1  ;;  %v324_v42 = vadd.f32 %v363_v37, %v303_v39  ;;  %325 = vst [vmem:[#allocation8] sm:$0xff] %v323_v41 }
 0x21b   :  { %326 = vst [vmem:[#allocation8 + $0x8] sm:$0xff] %v324_v42 }
 0x21c   :  { %530 = shalt.err (!%p527_p0)
}
 0x21d   :  { %s531_s4 = scalar_lea.hbm %s662_s5, 256 }
 0x21e   :  { %p532_p1 = scmp.ne.s32.totalorder %s662_s5, %s531_s4  ;;  %p535_p2 = scmp.lt.u32.totalorder %s531_s4, %s662_s5 }
 0x220   :  { %p537_p3 = pnand %p535_p2, %p532_p1 }
 0x222   :  { %540 = shalt.err (!%p537_p3)
}
 0x223   :  { %s555_s15 = smov 128   ;;  %s556_s16 = smov 8  }
 0x224   :  { %338 = dma.vmem_to_hbm [thread:$0]  %s333_s7, 256, %s662_s5, [#allocation4], %s555_s15, %s555_s15, %s556_s16  }
 0x225   :  { %545 = dma.done.wait [#allocation4], 256  }
 0x226   :  { %546 = vsyncadd [#allocation4], 4294967040 }
 0x227   :  { %342 = vsyncpa [#allocation3], 1 }
 0x228   :  { %343 = vsyncpa [#allocation6], 1 }
 0x229   :  { %344 = vsyncpa [#allocation4], 1 }

// kernel: tpu_custom_call.1
= control target key start
LH: loop header
LB: loop body
LE: loop exit
PB: predicated region body
PF: predicated region fallthrough
CT: control target
= control target key end

     0   :  { %10 = vsyncpa [#allocation3], 0  ;;  %s657_s0 = inlined_call_operand.hbm [shape: bf16[16,128], index: 0, kind: input, shape index: {}]   ;;  %s658_s1 = inlined_call_operand.hbm [shape: bf16[128,128], index: 1, kind: input, shape index: {}]   ;;  %s659_s2 = inlined_call_operand.vmem [shape: f32[1,128], index: 2, kind: input, shape index: {}]   ;;  %s660_s3 = inlined_call_operand.hbm [shape: bf16[128,128], index: 3, kind: input, shape index: {}]   ;;  %s661_s4 = inlined_call_operand.vmem [shape: f32[1,128], index: 4, kind: input, shape index: {}]   ;;  %s662_s5 = inlined_call_operand.hbm [shape: f32[16,128], index: 5, kind: output, shape index: {}]  }
   0x1   :  { %11 = vsyncpa [#allocation6], 0 }
   0x2   :  { %12 = vsyncpa [#allocation4], 0  ;;  %s547_s18 = smov [#allocation5]   ;;  %s548_s20 = smov [#allocation2]  }
   0x3   :  { %s30_s19 = sshll.u32 %s547_s18, 4  ;;  %s18_s21 = sshll.u32 %s548_s20, 4  ;;  %s31_s19 = int_to_ptr.vmem [resolvable:$true] %s30_s19  ;;  %s587_s21 = int_to_ptr.vmem [resolvable:$true] %s18_s21 }
   0x4   :  { %s453_s24 = scalar_lea.hbm %s658_s1, 1024 }
   0x5   :  { %p454_p0 = scmp.ne.s32.totalorder %s658_s1, %s453_s24  ;;  %p457_p1 = scmp.lt.u32.totalorder %s453_s24, %s658_s1 }
   0x7   :  { %p459_p2 = pnand %p457_p1, %p454_p0 }
   0x9   :  { %462 = shalt.err (!%p459_p2)
}
   0xa   :  { %s463_s29 = scalar_lea.vmem %s31_s19, 1024  ;;  %p468_p4 = scmp.lt.s32.totalorder %s31_s19, %s31_s19 }
   0xb   :  { %p464_p3 = scmp.ne.s32.totalorder %s31_s19, %s463_s29  ;;  %p469_p5 = scmp.lt.s32.totalorder %s463_s29, %s463_s29 }
   0xd   :  { %p470_p6 = por %p469_p5, %p468_p4 }
   0xf   :  { %p471_p7 = pnand %p470_p6, %p464_p3 }
  0x11   :  { %474 = shalt.err (!%p471_p7)
}
  0x12   :  { %s549_s30 = smov 64   ;;  %s550_s6 = smov 4  }
  0x13   :  { %36 = dma.hbm_to_vmem [thread:$0]  %s658_s1, 1024, %s31_s19, [#allocation6], %s549_s30, %s549_s30, %s550_s6  }
  0x14   :  { %s475_s11 = scalar_lea.hbm %s657_s0, 128 }
  0x15   :  { %p476_p8 = scmp.ne.s32.totalorder %s657_s0, %s475_s11  ;;  %p479_p9 = scmp.lt.u32.totalorder %s475_s11, %s657_s0 }
  0x17   :  { %p481_p10 = pnand %p479_p9, %p476_p8 }
  0x19   :  { %484 = shalt.err (!%p481_p10)
}
  0x1a   :  { %s485_s16 = scalar_lea.vmem %s587_s21, 128  ;;  %p490_p12 = scmp.lt.s32.totalorder %s587_s21, %s587_s21 }
  0x1b   :  { %p486_p11 = scmp.ne.s32.totalorder %s587_s21, %s485_s16  ;;  %p491_p13 = scmp.lt.s32.totalorder %s485_s16, %s485_s16 }
  0x1d   :  { %p492_p0 = por %p491_p13, %p490_p12 }
  0x1f   :  { %p493_p1 = pnand %p492_p0, %p486_p11 }
  0x21   :  { %496 = shalt.err (!%p493_p1)
}
  0x22   :  { %24 = dma.hbm_to_vmem [thread:$0]  %s657_s0, 128, %s587_s21, [#allocation3], %s549_s30, %s549_s30, %s550_s6  }
  0x23   :  { %s551_s18 = smov [#allocation7]   ;;  %s497_s23 = scalar_lea.hbm %s660_s3, 1024 }
  0x24   :  { %s44_s19 = sshll.u32 %s551_s18, 4  ;;  %p498_p2 = scmp.ne.s32.totalorder %s660_s3, %s497_s23  ;;  %s45_s19 = int_to_ptr.vmem [resolvable:$true] %s44_s19 }
  0x25   :  { %p501_p3 = scmp.lt.u32.totalorder %s497_s23, %s660_s3 }
  0x27   :  { %p503_p4 = pnand %p501_p3, %p498_p2 }
  0x29   :  { %506 = shalt.err (!%p503_p4)
}
  0x2a   :  { %s507_s28 = scalar_lea.vmem %s45_s19, 1024  ;;  %p512_p6 = scmp.lt.s32.totalorder %s45_s19, %s45_s19 }
  0x2b   :  { %p508_p5 = scmp.ne.s32.totalorder %s45_s19, %s507_s28  ;;  %p513_p7 = scmp.lt.s32.totalorder %s507_s28, %s507_s28 }
  0x2d   :  { %p514_p8 = por %p513_p7, %p512_p6 }
  0x2f   :  { %p515_p9 = pnand %p514_p8, %p508_p5 }
  0x31   :  { %518 = shalt.err (!%p515_p9)
}
  0x32   :  { %50 = dma.hbm_to_vmem [thread:$0]  %s660_s3, 1024, %s45_s19, [#allocation6], %s549_s30, %s549_s30, %s550_s6  }
  0x33   :  { %541 = dma.done.wait [#allocation3], 128  }
  0x34   :  { %542 = vsyncadd [#allocation3], 4294967168 }
  0x35   :  { %543 = dma.done.wait [#allocation6], 2048  }
  0x36   :  { %544 = vsyncadd [#allocation6], 4294965248  ;;  %v552_v0 = vmov 0.0   ;;  %vm553_vm0 = vmmov 0   ;;  %v432_v1 = vld [vmem:[#allocation5] sm:$0xff]   ;;  %v433_v2 = vld [vmem:[#allocation5 + $0x8] sm:$0xff]  }
  0x37   :  { %382 = vmatprep.subr.bf16.mxu0 %v552_v0  ;;  %398 = vmatprep.mubr.msk.bf16.mxu0 %vm553_vm0, %v552_v0  ;;  %v434_v3 = vld [vmem:[#allocation5 + $0x10] sm:$0xff]   ;;  %v441_v4 = vld [vmem:[#allocation7] sm:$0xff]   ;;  %v435_v5 = vld [vmem:[#allocation5 + $0x18] sm:$0xff]   ;;  %s554_s6 = smov [#allocation8]  }
  0x38   :  { %402 = vmatprep.subr.bf16.mxu1 %v552_v0  ;;  %418 = vmatprep.mubr.msk.bf16.mxu1 %vm553_vm0, %v552_v0  ;;  %v442_v6 = vld [vmem:[#allocation7 + $0x8] sm:$0xff]   ;;  %v436_v7 = vld [vmem:[#allocation5 + $0x20] sm:$0xff]   ;;  %v438_v9 = vld [vmem:[#allocation5 + $0x30] sm:$0xff]   ;;  %s332_s7 = sshll.u32 %s554_s6, 4  ;;  %s333_s7 = int_to_ptr.vmem [resolvable:$true] %s332_s7 }
  0x39   :  { %383 = vmatpush3.bf16.msra.mxu0 %v432_v1  ;;  %403 = vmatpush3.bf16.msra.mxu1 %v441_v4  ;;  %v437_v8 = vld [vmem:[#allocation5 + $0x28] sm:$0xff]   ;;  %v439_v10 = vld [vmem:[#allocation5 + $0x38] sm:$0xff]   ;;  %v443_v12 = vld [vmem:[#allocation7 + $0x10] sm:$0xff]   ;;  %s519_s8 = scalar_lea.vmem %s333_s7, 256  ;;  %p524_p11 = scmp.lt.s32.totalorder %s333_s7, %s333_s7 }
  0x3a   :  { %384 = vmatprep.subr.bf16.mxu0 %v552_v0  ;;  %404 = vmatprep.subr.bf16.mxu1 %v552_v0  ;;  %v440_v11 = vld [vmem:[#allocation2] sm:$0xff]   ;;  %v445_v14 = vld [vmem:[#allocation7 + $0x20] sm:$0xff]   ;;  %v446_v15 = vld [vmem:[#allocation7 + $0x28] sm:$0xff]   ;;  %p520_p10 = scmp.ne.s32.totalorder %s333_s7, %s519_s8  ;;  %p525_p12 = scmp.lt.s32.totalorder %s519_s8, %s519_s8 }
  0x3b   :  { %v444_v13 = vld [vmem:[#allocation7 + $0x18] sm:$0xff]   ;;  %v447_v16 = vld [vmem:[#allocation7 + $0x30] sm:$0xff]  }
  0x3c   :  { %v448_v17 = vld [vmem:[#allocation7 + $0x38] sm:$0xff]   ;;  %p526_p13 = por %p525_p12, %p524_p11 }
  0x3d   :  { %385 = vmatpush3.bf16.msra.mxu0 %v433_v2  ;;  %405 = vmatpush3.bf16.msra.mxu1 %v442_v6  ;;  %v345_v18 = vld [vmem:[%s659_s2] ss:$0 sm:$0xff] }
  0x3e   :  { %386 = vmatprep.subr.bf16.mxu0 %v552_v0  ;;  %406 = vmatprep.subr.bf16.mxu1 %v552_v0  ;;  %v363_v37 = vld [vmem:[%s661_s4] ss:$0 sm:$0xff]  ;;  %p527_p0 = pnand %p526_p13, %p520_p10 }
  0x41   :  { %387 = vmatpush3.bf16.msra.mxu0 %v434_v3  ;;  %407 = vmatpush3.bf16.msra.mxu1 %v443_v12 }
  0x42   :  { %388 = vmatprep.subr.bf16.mxu0 %v552_v0  ;;  %408 = vmatprep.subr.bf16.mxu1 %v552_v0 }
  0x45   :  { %389 = vmatpush3.bf16.msra.mxu0 %v435_v5  ;;  %409 = vmatpush3.bf16.msra.mxu1 %v444_v13 }
  0x46   :  { %390 = vmatprep.subr.bf16.mxu0 %v552_v0  ;;  %410 = vmatprep.subr.bf16.mxu1 %v552_v0 }
  0x49   :  { %391 = vmatpush3.bf16.msra.mxu0 %v436_v7  ;;  %411 = vmatpush3.bf16.msra.mxu1 %v445_v14 }
  0x4a   :  { %392 = vmatprep.subr.bf16.mxu0 %v552_v0  ;;  %412 = vmatprep.subr.bf16.mxu1 %v552_v0 }
  0x4d   :  { %393 = vmatpush3.bf16.msra.mxu0 %v437_v8  ;;  %413 = vmatpush3.bf16.msra.mxu1 %v446_v15 }
  0x4e   :  { %394 = vmatprep.subr.bf16.mxu0 %v552_v0  ;;  %414 = vmatprep.subr.bf16.mxu1 %v552_v0 }
  0x51   :  { %395 = vmatpush3.bf16.msra.mxu0 %v438_v9  ;;  %415 = vmatpush3.bf16.msra.mxu1 %v447_v16 }
  0x52   :  { %396 = vmatprep.subr.bf16.mxu0 %v552_v0  ;;  %416 = vmatprep.subr.bf16.mxu1 %v552_v0 }
  0x55   :  { %397 = vmatpush3.bf16.msra.mxu0 %v439_v10  ;;  %417 = vmatpush3.bf16.msra.mxu1 %v448_v17 }
  0x58   :  { %399 = vmatmul.mubr.bf16.vlgmr.msra.gmra.mrb[0].mxu0 %v440_v11 }
 0x12b   :  { %v182_v19 = vpop.f32.mrb[0].mxu0 }
 0x12c   :  { %v183_v20 = vadd.f32 %v345_v18, %v182_v19  ;;  %v400_v21 = vpop.f32.mrb[1].mxu0 }
 0x12d   :  { %v185_v22 = vpop.f32.mrb[2].mxu0 }
 0x12e   :  { %v191_v23 = vmul.f32 0.70710677, %v183_v20  ;;  %v186_v24 = vadd.f32 %v345_v18, %v185_v22  ;;  %v401_v25 = vpop.f32.mrb[3].mxu0  ;;  %v189_v30 = vmul.f32 0.5, %v183_v20 }
 0x130   :  { %449 = verf.f32 %v191_v23  ;;  %v192_v26 = vmul.f32 0.70710677, %v186_v24  ;;  %v190_v31 = vmul.f32 0.5, %v186_v24 }
 0x132   :  { %451 = verf.f32 %v192_v26 }
 0x13a   :  { %v450_v27 = vpop.eup %449 }
 0x13b   :  { %v195_v28 = vadd.f32 1.0, %v450_v27 }
 0x13c   :  { %v452_v29 = vpop.eup %451 }
 0x13d   :  { %v196_v32 = vadd.f32 1.0, %v452_v29  ;;  %v197_v33 = vmul.f32 %v195_v28, %v189_v30 }
 0x13f   :  { %v198_v34 = vmul.f32 %v196_v32, %v190_v31 }
 0x141   :  { %v201_v35 = vpack.c.bf16 %v198_v34, %v197_v33 }
 0x143   :  { %419 = vmatmul.mubr.bf16.vlgmr.msra.gmra.mrb[0].mxu1 %v201_v35 }
 0x216   :  { %v300_v36 = vpop.f32.mrb[0].mxu1 }
 0x217   :  { %v420_v38 = vpop.f32.mrb[1].mxu1  ;;  %v323_v41 = vadd.f32 %v363_v37, %v300_v36 }
 0x218   :  { %v303_v39 = vpop.f32.mrb[2].mxu1 }
 0x219   :  { %v421_v40 = vpop.f32.mrb[3].mxu1  ;;  %v324_v42 = vadd.f32 %v363_v37, %v303_v39  ;;  %325 = vst [vmem:[#allocation8] sm:$0xff] %v323_v41 }
 0x21b   :  { %326 = vst [vmem:[#allocation8 + $0x8] sm:$0xff] %v324_v42 }
 0x21c   :  { %530 = shalt.err (!%p527_p0)
}
 0x21d   :  { %s531_s4 = scalar_lea.hbm %s662_s5, 256 }
 0x21e   :  { %p532_p1 = scmp.ne.s32.totalorder %s662_s5, %s531_s4  ;;  %p535_p2 = scmp.lt.u32.totalorder %s531_s4, %s662_s5 }
 0x220   :  { %p537_p3 = pnand %p535_p2, %p532_p1 }
 0x222   :  { %540 = shalt.err (!%p537_p3)
}
 0x223   :  { %s555_s15 = smov 128   ;;  %s556_s16 = smov 8  }
 0x224   :  { %338 = dma.vmem_to_hbm [thread:$0]  %s333_s7, 256, %s662_s5, [#allocation4], %s555_s15, %s555_s15, %s556_s16  }
 0x225   :  { %545 = dma.done.wait [#allocation4], 256  }
 0x226   :  { %546 = vsyncadd [#allocation4], 4294967040 }
 0x227   :  { %342 = vsyncpa [#allocation3], 1 }
 0x228   :  { %343 = vsyncpa [#allocation6], 1 }
 0x229   :  { %344 = vsyncpa [#allocation4], 1 }

</bundles_post_ra>
